<compile_context>
chip_gen: v5e
topology: v5e:2x2
jax: 0.10.0
libtpu: 0.0.40
codegen_flags: <defaults>
</compile_context>

<pallas_src>
import numpy as np
import jax
import jax.numpy as jnp
from jax.experimental import pallas as pl
from jax.experimental.pallas import tpu as pltpu


# ----------------------------- Pallas kernel ---------------------------------

def diffusion_forward_kernel(xaug_ref, eaug_ref, wa_ref, w1e_ref, w2_ref, b2_ref,
                             et_ref):
    """One lane tile of the fused sample_xt + extractor-MLP forward.

    xaug_ref : (C+4, TN)  rows = [x (C rows) ; beta ; sin(beta) ; cos(beta) ; 1]
    eaug_ref : (C+2, TN)  rows = [e (C rows) ; sqrt(a_cum[t]) ; sqrt(1-a_cum[t])]
    wa_ref   : (H, C+4)   packed [W1x | Tp | b1]
    w1e_ref  : (H, C)
    w2_ref   : (C, H)
    b2_ref   : (C, 1)
    et_ref   : (C, TN)
    """
    C = et_ref.shape[0]

    xaug = xaug_ref[...]                        # (C+4, TN)
    eaug = eaug_ref[...]                        # (C+2, TN)

    x = xaug[0:C, :]                            # (C, TN)
    e = eaug[0:C, :]                            # (C, TN)
    sqrt_a = eaug[C:C + 1, :]                   # (1, TN), per-batch value per lane
    sqrt_1ma = eaug[C + 1:C + 2, :]             # (1, TN)

    # ---- sample_xt: xt = x0 * sqrt(a_cum[t]) + e * sqrt(1 - a_cum[t]) -------
    xt = x * sqrt_a + e * sqrt_1ma              # (C, TN)

    # ---- layer 1: relu([W1x|Tp|b1] @ [x;temb;1] + W1e @ xt) ------------------
    h = jnp.dot(wa_ref[...], xaug, preferred_element_type=jnp.float32)      # (H, TN)
    h = h + jnp.dot(w1e_ref[...], xt, preferred_element_type=jnp.float32)
    h = jnp.maximum(h, 0.0)

    # ---- layer 2: et = W2 @ h + b2 ------------------------------------------
    out = jnp.dot(w2_ref[...], h, preferred_element_type=jnp.float32) + b2_ref[...]
    et_ref[...] = out.astype(et_ref.dtype)


# ------------------------------- Wrapper --------------------------------------

def diffusion_forward(x, e, scal, temb, params, *, tile_n=1024):
    """x, e: (B, C, N) f32.  scal: (B, 2) = [sqrt(a), sqrt(1-a)].  temb: (B, 3).

    Returns et: (B, C, N).
    """
    B, C, N = x.shape
    w1x, w1e, b1, tp, w2, b2 = params
    H = w1x.shape[0]
    BN = B * N

    # ---- wrapper-side layout plumbing: collapse batch into the lane axis ----
    x2 = jnp.transpose(x, (1, 0, 2)).reshape(C, BN)          # (C, B*N)
    e2 = jnp.transpose(e, (1, 0, 2)).reshape(C, BN)

    rep = lambda v: jnp.repeat(v, N)                         # (B,) -> (B*N,)
    temb_rows = jnp.stack([rep(temb[:, 0]), rep(temb[:, 1]), rep(temb[:, 2])])  # (3, BN)
    ones_row = jnp.ones((1, BN), jnp.float32)
    scal_rows = jnp.stack([rep(scal[:, 0]), rep(scal[:, 1])])                   # (2, BN)

    xaug = jnp.concatenate([x2, temb_rows, ones_row], axis=0)   # (C+4, BN)
    eaug = jnp.concatenate([e2, scal_rows], axis=0)             # (C+2, BN)

    # fold time projection + bias into the first-layer weight
    wa = jnp.concatenate([w1x, tp, b1], axis=1)                 # (H, C+4)

    # ---- lane tiling ---------------------------------------------------------
    tn = min(tile_n, BN)
    assert BN % tn == 0 and tn % 128 == 0, "B*N must tile into multiples of 128"
    grid = (BN // tn,)

    lane_tiled = lambda rows: pl.BlockSpec((rows, tn), lambda j: (0, j))
    full = lambda shape: pl.BlockSpec(shape, lambda j: (0, 0))

    et2 = pl.pallas_call(
        diffusion_forward_kernel,
        out_shape=jax.ShapeDtypeStruct((C, BN), jnp.float32),
        grid=grid,
        in_specs=[
            lane_tiled(C + 4),     # xaug  [x ; temb ; 1]
            lane_tiled(C + 2),     # eaug  [e ; sqrt(a) ; sqrt(1-a)]
            full((H, C + 4)),      # wa = [W1x | Tp | b1]
            full((H, C)),          # w1e
            full((C, H)),          # w2
            full((C, 1)),          # b2
        ],
        out_specs=lane_tiled(C),
        compiler_params=pltpu.CompilerParams(
            dimension_semantics=("parallel",)),
    )(xaug, eaug, wa, w1e, w2, b2)

    return jnp.transpose(et2.reshape(C, B, N), (1, 0, 2))       # (B, C, N)


# --------------------------- Pure-JAX reference --------------------------------

def ref_forward(x, e, scal, temb, params):
    w1x, w1e, b1, tp, w2, b2 = params
    sqrt_a = scal[:, 0][:, None, None]
    sqrt_1ma = scal[:, 1][:, None, None]
    xt = x * sqrt_a + e * sqrt_1ma
    h = jnp.einsum("hc,bcn->bhn", w1x, x) + jnp.einsum("hc,bcn->bhn", w1e, xt)
    tbias = temb @ tp.T                                   # (B, H)
    h = jnp.maximum(h + b1[None] + tbias[:, :, None], 0.0)
    return jnp.einsum("ch,bhn->bcn", w2, h) + b2[None]


# ------------------------------- Main ------------------------------------------

if __name__ == "__main__":
    # Point-cloud-like input (B, 3, N), consistent with the module.
    B, C, N = 4, 3, 512
    H = 32                      # synthetic extractor hidden width
    TOTAL_STEPS = 100

    key = jax.random.PRNGKey(0)
    kx, kt, ke, kw1x, kw1e, kb1, ktp, kw2, kb2 = jax.random.split(key, 9)

    # Diffusion schedule buffers (as in __init__).
    betas = jnp.linspace(1e-4, 8e-3, TOTAL_STEPS, dtype=jnp.float32)
    alphas = 1.0 - betas
    alphas_cum = jnp.cumprod(alphas, axis=0)

    # Input and the forward-pass randomness (glue, deterministic).
    x = jax.random.normal(kx, (B, C, N), dtype=jnp.float32)
    timesteps = jax.random.randint(kt, (B,), 0, TOTAL_STEPS)
    e = jax.random.normal(ke, (B, C, N), dtype=jnp.float32)

    a_t = alphas_cum[timesteps]                                       # (B,)
    scal = jnp.stack([jnp.sqrt(a_t), jnp.sqrt(1.0 - a_t)], axis=1)    # (B, 2)

    beta_t = betas[timesteps]                                         # (B,)
    time_emb = jnp.stack([beta_t, jnp.sin(beta_t), jnp.cos(beta_t)], axis=1)  # (B, 3)

    # Deterministic synthetic extractor parameters.
    w1x = jax.random.normal(kw1x, (H, C), dtype=jnp.float32) * 0.2
    w1e = jax.random.normal(kw1e, (H, C), dtype=jnp.float32) * 0.2
    b1 = jax.random.normal(kb1, (H, 1), dtype=jnp.float32) * 0.1
    tp = jax.random.normal(ktp, (H, 3), dtype=jnp.float32) * 0.2
    w2 = jax.random.normal(kw2, (C, H), dtype=jnp.float32) * 0.2
    b2 = jax.random.normal(kb2, (C, 1), dtype=jnp.float32) * 0.1
    params = (w1x, w1e, b1, tp, w2, b2)

    et = diffusion_forward(x, e, scal, time_emb, params)
    et = jax.block_until_ready(et)

    # forward() returns (e, et)
    out_e, out_et = e, et

    et_ref = ref_forward(x, e, scal, time_emb, params)
    np.testing.assert_allclose(np.asarray(out_et), np.asarray(et_ref),
                               rtol=1e-5, atol=1e-5)

    print("KERNEL_OK")
</pallas_src>

<mosaic_0001>
module attributes {stable_mosaic.version = 11 : i64} {
  func.func @diffusion_forward_kernel(%arg0: i32, %arg1: memref<7x1024xf32, #tpu.memory_space<vmem>>, %arg2: memref<5x1024xf32, #tpu.memory_space<vmem>>, %arg3: memref<32x7xf32, #tpu.memory_space<vmem>>, %arg4: memref<32x3xf32, #tpu.memory_space<vmem>>, %arg5: memref<3x32xf32, #tpu.memory_space<vmem>>, %arg6: memref<3x1xf32, #tpu.memory_space<vmem>>, %arg7: memref<3x1024xf32, #tpu.memory_space<vmem>>) attributes {dimension_semantics = [#tpu.dimension_semantics<parallel>], iteration_bounds = array<i64: 2>, scalar_prefetch = 0 : i64, scratch_operands = 0 : i64, tpu.core_type = #tpu.core_type<tc>, window_params = [{transform_indices = @transform_0, window_bounds = array<i64: 7, 1024>}, {transform_indices = @transform_1, window_bounds = array<i64: 5, 1024>}, {pipeline_mode = #tpu.pipeline_mode<synchronous>, transform_indices = @transform_2, window_bounds = array<i64: 32, 7>}, {pipeline_mode = #tpu.pipeline_mode<synchronous>, transform_indices = @transform_3, window_bounds = array<i64: 32, 3>}, {pipeline_mode = #tpu.pipeline_mode<synchronous>, transform_indices = @transform_4, window_bounds = array<i64: 3, 32>}, {pipeline_mode = #tpu.pipeline_mode<synchronous>, transform_indices = @transform_5, window_bounds = array<i64: 3, 1>}, {transform_indices = @transform_6, window_bounds = array<i64: 3, 1024>}]} {
    %c0 = arith.constant 0 : index
    %c0_0 = arith.constant 0 : index
    %0 = vector.load %arg1[%c0, %c0_0] : memref<7x1024xf32, #tpu.memory_space<vmem>>, vector<7x1024xf32>
    %c0_1 = arith.constant 0 : index
    %c0_2 = arith.constant 0 : index
    %1 = vector.load %arg2[%c0_1, %c0_2] : memref<5x1024xf32, #tpu.memory_space<vmem>>, vector<5x1024xf32>
    %2 = vector.extract_strided_slice %0 {offsets = [0, 0], sizes = [3, 1024], strides = [1, 1]} : vector<7x1024xf32> to vector<3x1024xf32>
    %3 = vector.extract_strided_slice %1 {offsets = [0, 0], sizes = [3, 1024], strides = [1, 1]} : vector<5x1024xf32> to vector<3x1024xf32>
    %4 = vector.extract_strided_slice %1 {offsets = [3, 0], sizes = [1, 1024], strides = [1, 1]} : vector<5x1024xf32> to vector<1x1024xf32>
    %5 = vector.extract_strided_slice %1 {offsets = [4, 0], sizes = [1, 1024], strides = [1, 1]} : vector<5x1024xf32> to vector<1x1024xf32>
    %6 = vector.broadcast %4 : vector<1x1024xf32> to vector<3x1024xf32>
    %7 = arith.mulf %2, %6 : vector<3x1024xf32>
    %8 = vector.broadcast %5 : vector<1x1024xf32> to vector<3x1024xf32>
    %9 = arith.mulf %3, %8 : vector<3x1024xf32>
    %10 = arith.addf %7, %9 : vector<3x1024xf32>
    %c0_3 = arith.constant 0 : index
    %c0_4 = arith.constant 0 : index
    %11 = vector.load %arg3[%c0_3, %c0_4] : memref<32x7xf32, #tpu.memory_space<vmem>>, vector<32x7xf32>
    %cst = arith.constant dense<0.000000e+00> : vector<32x1024xf32>
    %12 = tpu.matmul %11, %0, %cst {dimension_numbers = #tpu.dot_dimension_numbers<[1], [0], [0], [1], [0, 0, 1, 1], [], []>} : vector<32x7xf32>, vector<7x1024xf32>, vector<32x1024xf32> -> vector<32x1024xf32>
    %c0_5 = arith.constant 0 : index
    %c0_6 = arith.constant 0 : index
    %13 = vector.load %arg4[%c0_5, %c0_6] : memref<32x3xf32, #tpu.memory_space<vmem>>, vector<32x3xf32>
    %cst_7 = arith.constant dense<0.000000e+00> : vector<32x1024xf32>
    %14 = tpu.matmul %13, %10, %cst_7 {dimension_numbers = #tpu.dot_dimension_numbers<[1], [0], [0], [1], [0, 0, 1, 1], [], []>} : vector<32x3xf32>, vector<3x1024xf32>, vector<32x1024xf32> -> vector<32x1024xf32>
    %15 = arith.addf %12, %14 : vector<32x1024xf32>
    %cst_8 = arith.constant 0.000000e+00 : f32
    %16 = vector.broadcast %cst_8 : f32 to vector<32x1024xf32>
    %17 = arith.maximumf %15, %16 : vector<32x1024xf32>
    %c0_9 = arith.constant 0 : index
    %c0_10 = arith.constant 0 : index
    %18 = vector.load %arg5[%c0_9, %c0_10] : memref<3x32xf32, #tpu.memory_space<vmem>>, vector<3x32xf32>
    %cst_11 = arith.constant dense<0.000000e+00> : vector<3x1024xf32>
    %19 = tpu.matmul %18, %17, %cst_11 {dimension_numbers = #tpu.dot_dimension_numbers<[1], [0], [0], [1], [0, 0, 1, 1], [], []>} : vector<3x32xf32>, vector<32x1024xf32>, vector<3x1024xf32> -> vector<3x1024xf32>
    %c0_12 = arith.constant 0 : index
    %c0_13 = arith.constant 0 : index
    %20 = vector.load %arg6[%c0_12, %c0_13] : memref<3x1xf32, #tpu.memory_space<vmem>>, vector<3x1xf32>
    %21 = vector.broadcast %20 : vector<3x1xf32> to vector<3x1024xf32>
    %22 = arith.addf %19, %21 : vector<3x1024xf32>
    %c0_14 = arith.constant 0 : index
    %c0_15 = arith.constant 0 : index
    %23 = vector.load %arg7[%c0_14, %c0_15] : memref<3x1024xf32, #tpu.memory_space<vmem>>, vector<3x1024xf32>
    tpu.vector_store %arg7[%c0_14, %c0_15], %22 {strides = array<i32>} : memref<3x1024xf32, #tpu.memory_space<vmem>>, vector<3x1024xf32>,
    return
  }
  func.func @transform_0(%arg0: i32) -> (i32, i32) {
    %c0_i32 = arith.constant 0 : i32
    %c0_i32_0 = arith.constant 0 : i32
    return %c0_i32, %arg0 : i32, i32
  }
  func.func @transform_1(%arg0: i32) -> (i32, i32) {
    %c0_i32 = arith.constant 0 : i32
    %c0_i32_0 = arith.constant 0 : i32
    return %c0_i32, %arg0 : i32, i32
  }
  func.func @transform_2(%arg0: i32) -> (i32, i32) {
    %c0_i32 = arith.constant 0 : i32
    %c0_i32_0 = arith.constant 0 : i32
    %c0_i32_1 = arith.constant 0 : i32
    return %c0_i32, %c0_i32_0 : i32, i32
  }
  func.func @transform_3(%arg0: i32) -> (i32, i32) {
    %c0_i32 = arith.constant 0 : i32
    %c0_i32_0 = arith.constant 0 : i32
    %c0_i32_1 = arith.constant 0 : i32
    return %c0_i32, %c0_i32_0 : i32, i32
  }
  func.func @transform_4(%arg0: i32) -> (i32, i32) {
    %c0_i32 = arith.constant 0 : i32
    %c0_i32_0 = arith.constant 0 : i32
    %c0_i32_1 = arith.constant 0 : i32
    return %c0_i32, %c0_i32_0 : i32, i32
  }
  func.func @transform_5(%arg0: i32) -> (i32, i32) {
    %c0_i32 = arith.constant 0 : i32
    %c0_i32_0 = arith.constant 0 : i32
    %c0_i32_1 = arith.constant 0 : i32
    return %c0_i32, %c0_i32_0 : i32, i32
  }
  func.func @transform_6(%arg0: i32) -> (i32, i32) {
    %c0_i32 = arith.constant 0 : i32
    %c0_i32_0 = arith.constant 0 : i32
    return %c0_i32, %arg0 : i32, i32
  }
}

</mosaic_0001>

<bundles_post_ra>
// kernel: tpu_custom_call.1
= control target key start
LH: loop header
LB: loop body
LE: loop exit
PB: predicated region body
PF: predicated region fallthrough
CT: control target
= control target key end

     0   :  { %s1991_s0 = inlined_call_operand.hbm [shape: f32[7,2048], index: 0, kind: input, shape index: {}]   ;;  %s1992_s1 = inlined_call_operand.hbm [shape: f32[5,2048], index: 1, kind: input, shape index: {}]   ;;  %s1993_s2 = inlined_call_operand.vmem [shape: f32[32,7], index: 2, kind: input, shape index: {}]   ;;  %s1994_s3 = inlined_call_operand.vmem [shape: f32[32,3], index: 3, kind: input, shape index: {}]   ;;  %s1995_s4 = inlined_call_operand.vmem [shape: f32[3,32], index: 4, kind: input, shape index: {}]   ;;  %s1996_s5 = inlined_call_operand.vmem [shape: f32[3,1], index: 5, kind: input, shape index: {}]   ;;  %s1997_s6 = inlined_call_operand.hbm [shape: f32[3,2048], index: 6, kind: output, shape index: {}]  }
   0x1   :  { %1999 = sst [smem:[#allocation13_spill]] %s1991_s0 }
   0x2   :  { %11 = vsyncpa [#allocation3], 0 }
   0x3   :  { %13 = vsyncpa [#allocation3 + $0x1], 0 }
   0x4   :  { %14 = vsyncpa [#allocation6], 0 }
   0x5   :  { %16 = vsyncpa [#allocation6 + $0x1], 0 }
   0x6   :  { %17 = vsyncpa [#allocation4], 0 }
   0x7   :  { %19 = vsyncpa [#allocation4 + $0x1], 0  ;;  %s1585_s21 = smov 0   ;;  %s1587_s22 = smov 0  }
   0x8   :  { %s1589_s23 = smov 0   ;;  %s1591_s24 = smov 0  }
   0x9 LB: > { %2000 = sst [smem:[#allocation11_spill]] %s1543_s23  ;;  %s1606_s25 = sadd.s32 4294967295, %s1547_s24   ;;  %s1547_s24 = sphi %s1591_s24, %s2014_s24   ;;  %s1543_s23 = sphi %s1589_s23, %s2011_s23   ;;  %s1539_s22 = sphi %s1587_s22, %s2013_s22   ;;  %s1535_s21 = sphi %s1585_s21, %s2012_s21  }
   0xa   : > { %s1255_s26 = sadd.s32 4294967294, %s1547_s24   ;;  %s1610_s27 = sadd.s32 1, %s1547_s24  }
   0xb   : > { %s32_s28 = sadd.s32 1, %s1543_s23  ;;  %s29_s29 = ssub.s32 %s1547_s24, %s1610_s27 }
   0xc   : > { %p39_p0 = scmp.ne.s32.totalorder %s1543_s23, %s1539_s22  ;;  %p30_p1 = scmp.eq.s32.totalorder %s29_s29, 0 }
   0xd   : > { %p40_p2 = scmp.eq.s32.totalorder %s1547_s24, 0  ;;  %p45_p3 = scmp.ne.s32.totalorder %s1539_s22, %s1535_s21 }
   0xe   : > { %p46_p4 = scmp.eq.s32.totalorder %s1606_s25, 0  ;;  %p179_p7 = scmp.eq.s32.totalorder %s1606_s25, 1 }
   0xf   : > { %s1622_s30 = scalar_select %p30_p1, %s1543_s23, %s32_s28  }
  0x10   : > { %p1624_p5 = por %p40_p2, %p39_p0  ;;  %p1628_p6 = por %p46_p4, %p45_p3 }
  0x11   : > { %2001 = sst [smem:[#allocation12_spill]] %s1622_s30  ;;  %p185_p8 = scmp.eq.s32.totalorder %s1255_s26, 1 }
  0x12   : > { %p1381_p10 = scmp.lt.s32.totalorder %s1547_s24, 2  ;;  %p1635_p11 = por %p179_p7, %p39_p0 }
  0x13   : > { %p1639_p12 = por %p185_p8, %p45_p3  ;;  %s1644_s11 = sand.u32 1, %s1543_s23  }
  0x14   : > { %s1361_s12 = sshll.u32 %s1547_s24, 6  ;;  %s1258_s13 = sshll.u32 %s1644_s11, 6 }
  0x15   : > { %s2006_s0 = sld [smem:[#allocation13_spill]]  ;;  %s221_s18 = scalar_lea.vmem [#allocation2], %s1258_s13 }
  0x16   : > { %s230_s19 = sshll.u32 %s221_s18, 4  ;;  %p1653_p13 = pnand %p1381_p10, %p1624_p5  ;;  %s231_s19 = int_to_ptr.vmem [resolvable:$true] %s230_s19 }
  0x17   : > { %p1264_p0 = scmp.ge.s32.totalorder %s1547_s24, 1  ;;  %p255_p1 = scmp.lt.s32.totalorder %s1547_s24, 3 }
  0x18   : > { %s218_s26 = scalar_lea.sflag [#allocation3], %s1644_s11  ;;  %p1421_p3 = pneg %p1653_p13 }
  0x1b   : > { %s226_s16 = scalar_lea.hbm %s2006_s0, %s1361_s12  ;;  %s1424_s15 = scalar_lea.hbm %s2006_s0, 128 }
  0x1c   : > { %s228_s17 = sshll.u32 %s226_s16, 4  ;;  %s229_s17 = int_to_ptr.hbm [resolvable:$true] %s228_s17 }
  0x1d   : > { %s1417_s28 = sshra.s32 %s229_s17, 4  ;;  %s1418_s28 = int_to_ptr.hbm [resolvable:$true] %s1417_s28 }
  0x1e   : > { %s1419_s29 = scalar_lea.hbm %s1418_s28, 64  ;;  %p1425_p5 = scmp.lt.s32.totalorder %s1418_s28, %s2006_s0 }
  0x1f   : > { %p1420_p2 = scmp.ne.s32.totalorder %s1418_s28, %s1419_s29  ;;  %p1426_p8 = scmp.lt.s32.totalorder %s1424_s15, %s1419_s29 }
  0x21   : > { %p1422_p4 = pnand %p1421_p3, %p1420_p2  ;;  %p1427_p10 = por %p1426_p8, %p1425_p5 }
  0x23   : > { %p1423_p7 = pneg %p1422_p4 }
  0x25   : > { %p1428_p9 = pnand %p1427_p10, %p1423_p7 }
  0x27   : > { %1431 = shalt.err (!%p1428_p9)
}
  0x28   : > { %1373 = dma.hbm_to_vmem [thread:$0]  (!%p1653_p13), %s229_s17, 1024, %s231_s19, %s218_s26  }
  0x29   : > { %p1677_p2 = pnand %p1264_p0, %p255_p1  ;;  %s246_s28 = scalar_lea.hbm %s1992_s1, %s1361_s12 }
  0x2a   : > { %s248_s29 = sshll.u32 %s246_s28, 4  ;;  %s241_s15 = scalar_lea.vmem [#allocation5], %s1258_s13  ;;  %s249_s29 = int_to_ptr.hbm [resolvable:$true] %s248_s29 }
  0x2b   : > { %s250_s18 = sshll.u32 %s241_s15, 4  ;;  %s238_s0 = scalar_lea.sflag [#allocation6], %s1644_s11  ;;  %s251_s18 = int_to_ptr.vmem [resolvable:$true] %s250_s18 }
  0x2c   : > { %s1447_s30 = sshra.s32 %s249_s29, 4  ;;  %s1454_s26 = scalar_lea.hbm %s1992_s1, 128  ;;  %s1448_s30 = int_to_ptr.hbm [resolvable:$true] %s1447_s30 }
  0x2d   : > { %s1449_s23 = scalar_lea.hbm %s1448_s30, 64  ;;  %p1455_p4 = scmp.lt.s32.totalorder %s1448_s30, %s1992_s1 }
  0x2e   : > { %p1450_p9 = scmp.ne.s32.totalorder %s1448_s30, %s1449_s23  ;;  %p1456_p7 = scmp.lt.s32.totalorder %s1454_s26, %s1449_s23 }
  0x30   : > { %p1452_p0 = pnand %p1450_p9, %p1421_p3  ;;  %p1457_p5 = por %p1456_p7, %p1455_p4 }
  0x32   : > { %p1453_p1 = pneg %p1452_p0 }
  0x34   : > { %p1458_p8 = pnand %p1457_p5, %p1453_p1 }
  0x36   : > { %1461 = shalt.err (!%p1458_p8)
}
  0x37   : > { %1376 = dma.hbm_to_vmem [thread:$0]  (!%p1653_p13), %s249_s29, 1024, %s251_s18, %s238_s0  }
  0x38   : > { %259 = sbr.rel (%p1677_p2) target bundleno = 480 (0x1e0), region = 44  ;;  %s1699_s11 = sand.u32 (!%p1677_p2), 1, %s1539_s22  }
  0x39   : > { %s1265_s13 = sshll.u32 (!%p1677_p2), %s1699_s11, 6  ;;  %s262_s16 = scalar_lea.sflag (!%p1677_p2), [#allocation3], %s1699_s11 }
  0x3a   : > { %s1703_s28 = scalar_lea.vmem (!%p1677_p2), [#allocation2], %s1265_s13 }
  0x3d   : > { %1522 = dma.done.wait (%p1628_p6), %s262_s16, 1024  }
  0x3e   : > { %1524 = vsyncadd (%p1628_p6), %s262_s16, 4294966272  ;;  %s272_s0 = scalar_lea.sflag [#allocation6], %s1699_s11  ;;  %s1710_s23 = scalar_lea.vmem [#allocation5], %s1265_s13 }
  0x3f   : > { %1526 = dma.done.wait (%p1628_p6), %s272_s0, 1024  }
  0x40   : > { %1528 = vsyncadd (%p1628_p6), %s272_s0, 4294966272  ;;  %v1717_v0 = vld [vmem:[%s1703_s28] sm:$0x7f]  ;;  %vm390_vm0 = vcmask 1042432   ;;  %vm377_vm1 = vcmask 23552   ;;  %vm660_vm2 = vcmask 1046528  }
  0x41   : > { %v321_v1 = vld [vmem:[%s1710_s23] sm:$0x1f]  ;;  %v1721_v4 = vld [vmem:[%s1703_s28 + $0x8] sm:$0x7f]  ;;  %v1725_v8 = vld [vmem:[%s1703_s28 + $0x10] sm:$0x7f] }
  0x42   : > { %v329_v2 = vperm.slane %v321_v1, 3  ;;  %v345_v3 = vperm.slane %v321_v1, 4  ;;  %v322_v5 = vld [vmem:[%s1710_s23 + $0x8] sm:$0x1f]  ;;  %v323_v9 = vld [vmem:[%s1710_s23 + $0x10] sm:$0x1f] }
  0x43   : > { %v330_v6 = vperm.slane %v322_v5, 3  ;;  %v346_v7 = vperm.slane %v322_v5, 4  ;;  %v331_v12 = vperm.slane %v323_v9, 3  ;;  %v347_v13 = vperm.slane %v323_v9, 4  ;;  %v316_v14 = vld [vmem:[%s1703_s28 + $0x18] sm:$0x7f] }
  0x44   : > { %v337_v10 = vmul.f32 %v329_v2, %v1717_v0  ;;  %v353_v11 = vmul.f32 %v345_v3, %v321_v1  ;;  %v324_v15 = vld [vmem:[%s1710_s23 + $0x18] sm:$0x1f]  ;;  %v1740_v25 = vld [vmem:[%s1994_s3] sm:$0xff]  ;;  %v327_v27 = vld [vmem:[%s1710_s23 + $0x30] sm:$0x1f]  ;;  %vm647_vm3 = vcmask 56320  }
  0x45   : > { %v338_v16 = vmul.f32 %v330_v6, %v1721_v4  ;;  %v354_v17 = vmul.f32 %v346_v7, %v322_v5  ;;  %v332_v18 = vperm.slane %v324_v15, 3  ;;  %v348_v19 = vperm.slane %v324_v15, 4  ;;  %v1733_v20 = vld [vmem:[%s1703_s28 + $0x38] sm:$0x7f]  ;;  %v1744_v32 = vld [vmem:[%s1703_s28 + $0x30] sm:$0x7f] }
  0x46   : > { %v328_v21 = vld [vmem:[%s1710_s23 + $0x38] sm:$0x1f]  ;;  %v361_v22 = vadd.f32 %v353_v11, %v337_v10  ;;  %v339_v23 = vmul.f32 %v331_v12, %v1725_v8  ;;  %v355_v24 = vmul.f32 %v347_v13, %v323_v9  ;;  %v326_v33 = vld [vmem:[%s1710_s23 + $0x28] sm:$0x1f]  ;;  %v335_v36 = vperm.slane %v327_v27, 3  ;;  %v375_v58 = vld [vmem:[%s1994_s3 + $0x10] sm:$0xff] }
  0x47   : > { %v336_v26 = vperm.slane %v328_v21, 3  ;;  %v362_v28 = vadd.f32 %v354_v17, %v338_v16  ;;  %v340_v29 = vmul.f32 %v332_v18, %v316_v14  ;;  %v356_v30 = vmul.f32 %v348_v19, %v324_v15  ;;  %v318_v38 = vld [vmem:[%s1703_s28 + $0x28] sm:$0x7f]  ;;  %v325_v39 = vld [vmem:[%s1710_s23 + $0x20] sm:$0x1f]  ;;  %v376_v59 = vld [vmem:[%s1994_s3 + $0x18] sm:$0xff] }
  0x48   : > { %v352_v31 = vperm.slane %v328_v21, 4  ;;  %1268 = vmatpush.msk.msra.mxu0 %vm390_vm0, %v361_v22  ;;  %v363_v34 = vadd.f32 %v355_v24, %v339_v23  ;;  %v351_v37 = vperm.slane %v327_v27, 4  ;;  %v334_v42 = vperm.slane %v326_v33, 3  ;;  %v317_v44 = vld [vmem:[%s1703_s28 + $0x20] sm:$0x7f]  ;;  %v374_v56 = vld [vmem:[%s1994_s3 + $0x8] sm:$0xff] }
  0x49   : > { %v344_v35 = vmul.f32 %v336_v26, %v1733_v20  ;;  %1273 = vmatpush.msk.msra.mxu1 %vm390_vm0, %v362_v28  ;;  %v364_v40 = vadd.f32 %v356_v30, %v340_v29  ;;  %1269 = vmatmul.msk.f32.vlgmr.msra.gmra.mxu0 %vm377_vm1, %v1740_v25  ;;  %v350_v43 = vperm.slane %v326_v33, 4  ;;  %v343_v45 = vmul.f32 %v335_v36, %v1744_v32  ;;  %v369_v60 = vld [vmem:[%s1993_s2] sm:$0xff]  ;;  %v370_v61 = vld [vmem:[%s1993_s2 + $0x8] sm:$0xff]  ;;  %v371_v62 = vld [vmem:[%s1993_s2 + $0x10] sm:$0xff]  ;;  %s1267_s7 = sshll.u32 %s1699_s11, 5  ;;  %s1363_s15 = sshll.u32 %s1606_s25, 5 }
  0x4a   : > { %v360_v41 = vmul.f32 %v352_v31, %v328_v21  ;;  %1278 = vmatpush.msk.msra.mxu2 %vm390_vm0, %v363_v34  ;;  %1274 = vmatmul.msk.f32.vlgmr.msra.gmra.mxu1 %vm377_vm1, %v1740_v25  ;;  %v359_v46 = vmul.f32 %v351_v37, %v327_v27  ;;  %v333_v47 = vperm.slane %v325_v39, 3  ;;  %v349_v48 = vperm.slane %v325_v39, 4  ;;  %v372_v63 = vld [vmem:[%s1993_s2 + $0x18] sm:$0xff]  ;;  %s309_s29 = scalar_lea.vmem [#allocation7], %s1267_s7  ;;  %s1157_s19 = scalar_lea.hbm %s1997_s6, %s1363_s15 }
  0x4b   : > { %1283 = vmatpush.msk.msra.mxu3 %vm390_vm0, %v364_v40  ;;  %1279 = vmatmul.msk.f32.vlgmr.msra.gmra.mxu2 %vm377_vm1, %v1740_v25  ;;  %v342_v50 = vmul.f32 %v334_v42, %v318_v38  ;;  %v358_v51 = vmul.f32 %v350_v43, %v326_v33  ;;  %vm956_vm4 = vcmask 261120   ;;  %vm1132_vm5 = vcmask 1043456   ;;  %s1159_s26 = sshll.u32 %s309_s29, 4  ;;  %s1161_s14 = sshll.u32 %s1157_s19, 4  ;;  %s1160_s26 = int_to_ptr.vmem [resolvable:$true] %s1159_s26  ;;  %s1162_s14 = int_to_ptr.hbm [resolvable:$true] %s1161_s14 }
  0x4c   : > { %v368_v49 = vadd.f32 %v360_v41, %v344_v35  ;;  %1284 = vmatmul.msk.f32.vlgmr.msra.gmra.mxu3 %vm377_vm1, %v1740_v25  ;;  %v367_v52 = vadd.f32 %v359_v46, %v343_v45  ;;  %v341_v53 = vmul.f32 %v333_v47, %v317_v44  ;;  %v357_v54 = vmul.f32 %v349_v48, %v325_v39  ;;  %s1146_s12 = scalar_lea.sflag [#allocation4], %s1699_s11  ;;  %s1491_s13 = sshra.s32 %s1162_s14, 4  ;;  %s1492_s13 = int_to_ptr.hbm [resolvable:$true] %s1491_s13 }
  0x4d   : > { %v366_v55 = vadd.f32 %v358_v51, %v342_v50  ;;  %s1493_s25 = scalar_lea.hbm %s1492_s13, 32  ;;  %s1497_s0 = scalar_lea.hbm %s1997_s6, 64 }
  0x4e   : > { %1303 = vmatpush.msk.msrb.mxu3 %vm390_vm0, %v368_v49  ;;  %1298 = vmatpush.msk.msrb.mxu2 %vm390_vm0, %v367_v52  ;;  %v365_v57 = vadd.f32 %v357_v54, %v341_v53  ;;  %p1494_p6 = scmp.ne.s32.totalorder %s1492_s13, %s1493_s25  ;;  %p1498_p10 = scmp.lt.s32.totalorder %s1492_s13, %s1997_s6 }
  0x4f   : > { %1293 = vmatpush.msk.msrb.mxu1 %vm390_vm0, %v366_v55  ;;  %p1499_p2 = scmp.lt.s32.totalorder %s1497_s0, %s1493_s25 }
  0x50   : > { %1323 = vmatpush.msk.msra.mxu3 %vm660_vm2, %v316_v14  ;;  %1318 = vmatpush.msk.msra.mxu2 %vm660_vm2, %v1725_v8  ;;  %p1495_p13 = pnand %p1494_p6, %p1635_p11 }
  0x51   : > { %1288 = vmatpush.msk.msrb.mxu0 %vm390_vm0, %v365_v57  ;;  %1313 = vmatpush.msk.msra.mxu1 %vm660_vm2, %v1721_v4  ;;  %p1500_p9 = por %p1499_p2, %p1498_p10 }
  0x52   : > { %1270 = vmatmul.msk.f32.gmra.mxu0 %vm377_vm1, %v374_v56  ;;  %1275 = vmatmul.msk.f32.gmra.mxu1 %vm377_vm1, %v374_v56  ;;  %p1496_p3 = pneg %p1495_p13 }
  0x53   : > { %1308 = vmatpush.msk.msra.mxu0 %vm660_vm2, %v1717_v0  ;;  %1280 = vmatmul.msk.f32.gmra.mxu2 %vm377_vm1, %v374_v56 }
  0x54   : > { %1285 = vmatmul.msk.f32.gmra.mxu3 %vm377_vm1, %v374_v56  ;;  %p1501_p0 = pnand %p1500_p9, %p1496_p3 }
  0x5a   : > { %1271 = vmatmul.msk.f32.gmra.mxu0 %vm377_vm1, %v375_v58  ;;  %1276 = vmatmul.msk.f32.gmra.mxu1 %vm377_vm1, %v375_v58 }
  0x5b   : > { %1281 = vmatmul.msk.f32.gmra.mxu2 %vm377_vm1, %v375_v58 }
  0x5c   : > { %1286 = vmatmul.msk.f32.gmra.mxu3 %vm377_vm1, %v375_v58 }
  0x62   : > { %1272 = vmatmul.msk.f32.gmra.mxu0 %vm377_vm1, %v376_v59  ;;  %1277 = vmatmul.msk.f32.gmra.mxu1 %vm377_vm1, %v376_v59 }
  0x63   : > { %1282 = vmatmul.msk.f32.gmra.mxu2 %vm377_vm1, %v376_v59 }
  0x64   : > { %1287 = vmatmul.msk.f32.gmra.mxu3 %vm377_vm1, %v376_v59 }
  0x6a   : > { %1289 = vmatmul.msk.f32.vlgmr.msrb.gmra.mxu0 %vm377_vm1, %v1740_v25  ;;  %1294 = vmatmul.msk.f32.vlgmr.msrb.gmra.mxu1 %vm377_vm1, %v1740_v25 }
  0x6b   : > { %1328 = vmatpush.msk.msrb.mxu0 %vm660_vm2, %v317_v44  ;;  %1299 = vmatmul.msk.f32.vlgmr.msrb.gmra.mxu2 %vm377_vm1, %v1740_v25 }
  0x6c   : > { %1333 = vmatpush.msk.msrb.mxu1 %vm660_vm2, %v318_v38  ;;  %1304 = vmatmul.msk.f32.vlgmr.msrb.gmra.mxu3 %vm377_vm1, %v1740_v25 }
  0x6d   : > { %1338 = vmatpush.msk.msrb.mxu2 %vm660_vm2, %v1744_v32  ;;  %1343 = vmatpush.msk.msrb.mxu3 %vm660_vm2, %v1733_v20 }
  0x72   : > { %1290 = vmatmul.msk.f32.gmra.mxu0 %vm377_vm1, %v374_v56  ;;  %1295 = vmatmul.msk.f32.gmra.mxu1 %vm377_vm1, %v374_v56 }
  0x73   : > { %1300 = vmatmul.msk.f32.gmra.mxu2 %vm377_vm1, %v374_v56 }
  0x74   : > { %1305 = vmatmul.msk.f32.gmra.mxu3 %vm377_vm1, %v374_v56 }
  0x7a   : > { %1291 = vmatmul.msk.f32.gmra.mxu0 %vm377_vm1, %v375_v58  ;;  %1296 = vmatmul.msk.f32.gmra.mxu1 %vm377_vm1, %v375_v58 }
  0x7b   : > { %1301 = vmatmul.msk.f32.gmra.mxu2 %vm377_vm1, %v375_v58 }
  0x7c   : > { %1306 = vmatmul.msk.f32.gmra.mxu3 %vm377_vm1, %v375_v58 }
  0x82   : > { %1292 = vmatmul.msk.f32.gmra.mxu0 %vm377_vm1, %v376_v59  ;;  %1297 = vmatmul.msk.f32.gmra.mxu1 %vm377_vm1, %v376_v59 }
  0x83   : > { %1302 = vmatmul.msk.f32.gmra.mxu2 %vm377_vm1, %v376_v59 }
  0x84   : > { %1307 = vmatmul.msk.f32.gmra.mxu3 %vm377_vm1, %v376_v59 }
  0x8a   : > { %1309 = vmatmul.msk.f32.vlgmr.msra.gmra.mxu0 %vm647_vm3, %v369_v60  ;;  %1314 = vmatmul.msk.f32.vlgmr.msra.gmra.mxu1 %vm647_vm3, %v369_v60 }
  0x8b   : > { %1319 = vmatmul.msk.f32.vlgmr.msra.gmra.mxu2 %vm647_vm3, %v369_v60 }
  0x8c   : > { %1324 = vmatmul.msk.f32.vlgmr.msra.gmra.mxu3 %vm647_vm3, %v369_v60 }
  0x92   : > { %1310 = vmatmul.msk.f32.gmra.mxu0 %vm647_vm3, %v370_v61  ;;  %1315 = vmatmul.msk.f32.gmra.mxu1 %vm647_vm3, %v370_v61 }
  0x93   : > { %1320 = vmatmul.msk.f32.gmra.mxu2 %vm647_vm3, %v370_v61 }
  0x94   : > { %1325 = vmatmul.msk.f32.gmra.mxu3 %vm647_vm3, %v370_v61 }
  0x9a   : > { %1311 = vmatmul.msk.f32.gmra.mxu0 %vm647_vm3, %v371_v62  ;;  %1316 = vmatmul.msk.f32.gmra.mxu1 %vm647_vm3, %v371_v62 }
  0x9b   : > { %1321 = vmatmul.msk.f32.gmra.mxu2 %vm647_vm3, %v371_v62 }
  0x9c   : > { %1326 = vmatmul.msk.f32.gmra.mxu3 %vm647_vm3, %v371_v62 }
  0xa2   : > { %1312 = vmatmul.msk.f32.gmra.mxu0 %vm647_vm3, %v372_v63  ;;  %1317 = vmatmul.msk.f32.gmra.mxu1 %vm647_vm3, %v372_v63 }
  0xa3   : > { %1322 = vmatmul.msk.f32.gmra.mxu2 %vm647_vm3, %v372_v63 }
  0xa4   : > { %1327 = vmatmul.msk.f32.gmra.mxu3 %vm647_vm3, %v372_v63 }
  0xaa   : > { %1329 = vmatmul.msk.f32.vlgmr.msrb.gmra.mxu0 %vm647_vm3, %v369_v60  ;;  %1334 = vmatmul.msk.f32.vlgmr.msrb.gmra.mxu1 %vm647_vm3, %v369_v60 }
  0xab   : > { %1339 = vmatmul.msk.f32.vlgmr.msrb.gmra.mxu2 %vm647_vm3, %v369_v60 }
  0xac   : > { %1344 = vmatmul.msk.f32.vlgmr.msrb.gmra.mxu3 %vm647_vm3, %v369_v60 }
  0xb2   : > { %1330 = vmatmul.msk.f32.gmra.mxu0 %vm647_vm3, %v370_v61  ;;  %1335 = vmatmul.msk.f32.gmra.mxu1 %vm647_vm3, %v370_v61 }
  0xb3   : > { %1340 = vmatmul.msk.f32.gmra.mxu2 %vm647_vm3, %v370_v61 }
  0xb4   : > { %1345 = vmatmul.msk.f32.gmra.mxu3 %vm647_vm3, %v370_v61 }
  0xba   : > { %1331 = vmatmul.msk.f32.gmra.mxu0 %vm647_vm3, %v371_v62  ;;  %1336 = vmatmul.msk.f32.gmra.mxu1 %vm647_vm3, %v371_v62 }
  0xbb   : > { %1341 = vmatmul.msk.f32.gmra.mxu2 %vm647_vm3, %v371_v62 }
  0xbc   : > { %1346 = vmatmul.msk.f32.gmra.mxu3 %vm647_vm3, %v371_v62 }
  0xc2   : > { %1332 = vmatmul.msk.f32.gmra.mxu0 %vm647_vm3, %v372_v63  ;;  %1337 = vmatmul.msk.f32.gmra.mxu1 %vm647_vm3, %v372_v63 }
  0xc3   : > { %1342 = vmatmul.msk.f32.gmra.mxu2 %vm647_vm3, %v372_v63 }
  0xc4   : > { %1347 = vmatmul.msk.f32.gmra.mxu3 %vm647_vm3, %v372_v63 }
  0xc6   : > { %v432_v0 = vpop.f32.mrf.mxu0 }
  0xc7   : > { %v461_v1 = vpop.f32.mrf.mxu1 }
  0xce   : > { %v1866_v2 = vpop.f32.mrf.mxu2 }
  0xcf   : > { %v435_v3 = vpop.f32.mrf.mxu0  ;;  %v1868_v4 = vpop.f32.mrf.mxu3 }
  0xd0   : > { %v464_v5 = vpop.f32.mrf.mxu1 }
  0xd6   : > { %v1870_v6 = vpop.f32.mrf.mxu2 }
  0xd7   : > { %v438_v7 = vpop.f32.mrf.mxu0  ;;  %v1872_v8 = vpop.f32.mrf.mxu3 }
  0xd8   : > { %v467_v9 = vpop.f32.mrf.mxu1 }
  0xde   : > { %v496_v10 = vpop.f32.mrf.mxu2 }
  0xdf   : > { %v441_v11 = vpop.f32.mrf.mxu0  ;;  %v525_v12 = vpop.f32.mrf.mxu3 }
  0xe0   : > { %v470_v13 = vpop.f32.mrf.mxu1 }
  0xe6   : > { %v499_v14 = vpop.f32.mrf.mxu2 }
  0xe7   : > { %v1874_v15 = vpop.f32.mrf.mxu0  ;;  %v528_v16 = vpop.f32.mrf.mxu3 }
  0xe8   : > { %v1876_v17 = vpop.f32.mrf.mxu1 }
  0xee   : > { %v1878_v18 = vpop.f32.mrf.mxu2 }
  0xef   : > { %v1880_v19 = vpop.f32.mrf.mxu0  ;;  %v1882_v20 = vpop.f32.mrf.mxu3 }
  0xf0   : > { %v1884_v21 = vpop.f32.mrf.mxu1 }
  0xf6   : > { %v1886_v22 = vpop.f32.mrf.mxu2 }
  0xf7   : > { %v1888_v23 = vpop.f32.mrf.mxu0  ;;  %v1890_v24 = vpop.f32.mrf.mxu3 }
  0xf8   : > { %v1892_v25 = vpop.f32.mrf.mxu1 }
  0xfe   : > { %v1894_v26 = vpop.f32.mrf.mxu2 }
  0xff   : > { %v1896_v27 = vpop.f32.mrf.mxu0  ;;  %v1898_v28 = vpop.f32.mrf.mxu3 }
 0x100   : > { %v1900_v29 = vpop.f32.mrf.mxu1 }
 0x106   : > { %v1902_v30 = vpop.f32.mrf.mxu2 }
 0x107   : > { %v702_v31 = vpop.f32.mrf.mxu0  ;;  %v1904_v32 = vpop.f32.mrf.mxu3 }
 0x108   : > { %v731_v33 = vpop.f32.mrf.mxu1  ;;  %v703_v54 = vadd.f32 %v702_v31, %v432_v0 }
 0x109   : > { %v732_v56 = vadd.f32 %v731_v33, %v461_v1 }
 0x10a   : > { %v917_v62 = vmax.f32 %v703_v54, 0.0 }
 0x10e   : > { %v760_v34 = vpop.f32.mrf.mxu2 }
 0x10f   : > { %v705_v35 = vpop.f32.mrf.mxu0  ;;  %v789_v36 = vpop.f32.mrf.mxu3 }
 0x110   : > { %v734_v37 = vpop.f32.mrf.mxu1  ;;  %v706_v50 = vadd.f32 %v705_v35, %v435_v3 }
 0x111   : > { %v735_v52 = vadd.f32 %v734_v37, %v464_v5  ;;  %v918_v5 = vmax.f32 %v732_v56, 0.0 }
 0x112   : > { %v925_v58 = vmax.f32 %v706_v50, 0.0 }
 0x113   : > { %v926_v59 = vmax.f32 %v735_v52, 0.0 }
 0x116   : > { %v763_v38 = vpop.f32.mrf.mxu2 }
 0x117   : > { %v708_v39 = vpop.f32.mrf.mxu0  ;;  %v792_v40 = vpop.f32.mrf.mxu3  ;;  %v764_v1 = vadd.f32 %v763_v38, %v1870_v6  ;;  %v790_v6 = vadd.f32 %v789_v36, %v1868_v4  ;;  %v950_v4 = vld [vmem:[%s1996_s5] sm:$0x7]  ;;  %v1549_v36 = vmov 0  }
 0x118   : > { %v737_v41 = vpop.f32.mrf.mxu1  ;;  %v709_v44 = vadd.f32 %v708_v39, %v438_v7  ;;  %v793_v31 = vadd.f32 %v792_v40, %v1872_v8  ;;  %1416 = vset.pattern.permute.xlu0 %v1549_v36 }
 0x119   : > { %v738_v48 = vadd.f32 %v737_v41, %v467_v9  ;;  %v927_v8 = vmax.f32 %v764_v1, 0.0  ;;  %v920_v40 = vmax.f32 %v790_v6, 0.0  ;;  %953 = vperm.xlu0 %1416, %v950_v4  }
 0x11a   : > { %v933_v55 = vmax.f32 %v709_v44, 0.0 }
 0x11b   : > { %v934_v57 = vmax.f32 %v738_v48, 0.0 }
 0x11e   : > { %v766_v42 = vpop.f32.mrf.mxu2 }
 0x11f   : > { %v711_v43 = vpop.f32.mrf.mxu0  ;;  %v795_v45 = vpop.f32.mrf.mxu3  ;;  %v767_v63 = vadd.f32 %v766_v42, %v496_v10  ;;  %v1913_v10 = vld [vmem:[%s1995_s4] sm:$0x7] }
 0x120   : > { %v712_v46 = vadd.f32 %v711_v43, %v441_v11  ;;  %v740_v47 = vpop.f32.mrf.mxu1  ;;  %v796_v0 = vadd.f32 %v795_v45, %v525_v12 }
 0x121   : > { %v741_v49 = vadd.f32 %v740_v47, %v470_v13  ;;  %v935_v35 = vmax.f32 %v767_v63, 0.0 }
 0x122   : > { %v941_v51 = vmax.f32 %v712_v46, 0.0  ;;  %v936_v12 = vmax.f32 %v796_v0, 0.0 }
 0x123   : > { %v942_v53 = vmax.f32 %v741_v49, 0.0 }
 0x124   : > { %972 = vmatpush.msra.mxu0 %v941_v51 }
 0x125   : > { %992 = vmatpush.msra.mxu1 %v942_v53 }
 0x126   : > { %973 = vmatpush.msra.mxu0 %v933_v55  ;;  %v769_v60 = vpop.f32.mrf.mxu2 }
 0x127   : > { %993 = vmatpush.msra.mxu1 %v934_v57  ;;  %v1906_v61 = vpop.f32.mrf.mxu0  ;;  %v770_v7 = vadd.f32 %v769_v60, %v499_v14  ;;  %v798_v3 = vpop.f32.mrf.mxu3  ;;  %v761_v14 = vadd.f32 %v760_v34, %v1866_v2 }
 0x128   : > { %v847_v9 = vpop.f32.mrf.mxu1  ;;  %974 = vmatpush.msra.mxu0 %v925_v58  ;;  %v799_v11 = vadd.f32 %v798_v3, %v528_v16  ;;  %v928_v16 = vmax.f32 %v793_v31, 0.0  ;;  %v819_v57 = vadd.f32 %v1906_v61, %v1874_v15 }
 0x129   : > { %994 = vmatpush.msra.mxu1 %v926_v59  ;;  %v943_v13 = vmax.f32 %v770_v7, 0.0  ;;  %v919_v39 = vmax.f32 %v761_v14, 0.0 }
 0x12a   : > { %975 = vmatpush.msra.mxu0 %v917_v62  ;;  %v944_v33 = vmax.f32 %v799_v11, 0.0 }
 0x12b   : > { %995 = vmatpush.msra.mxu1 %v918_v5  ;;  %1012 = vmatpush.msra.mxu2 %v943_v13 }
 0x12c   : > { %1349 = vmatmul.msk.f32.vlgmr.msra.gmra.mxu1 %vm956_vm4, %v1913_v10  ;;  %1032 = vmatpush.msra.mxu3 %v944_v33 }
 0x12d   : > { %1348 = vmatmul.msk.f32.vlgmr.msra.gmra.mxu0 %vm956_vm4, %v1913_v10  ;;  %1013 = vmatpush.msra.mxu2 %v935_v35 }
 0x12e   : > { %1033 = vmatpush.msra.mxu3 %v936_v12  ;;  %v876_v37 = vpop.f32.mrf.mxu2 }
 0x12f   : > { %v821_v38 = vpop.f32.mrf.mxu0  ;;  %v905_v2 = vpop.f32.mrf.mxu3  ;;  %1014 = vmatpush.msra.mxu2 %v927_v8 }
 0x130   : > { %v850_v34 = vpop.f32.mrf.mxu1  ;;  %1034 = vmatpush.msra.mxu3 %v928_v16  ;;  %v822_v53 = vadd.f32 %v821_v38, %v1880_v19 }
 0x131   : > { %1015 = vmatpush.msra.mxu2 %v919_v39  ;;  %v851_v55 = vadd.f32 %v850_v34, %v1884_v21 }
 0x132   : > { %1035 = vmatpush.msra.mxu3 %v920_v40  ;;  %1350 = vmatmul.msk.f32.vlgmr.msra.gmra.mxu2 %vm956_vm4, %v1913_v10 }
 0x133   : > { %1351 = vmatmul.msk.f32.vlgmr.msra.gmra.mxu3 %vm956_vm4, %v1913_v10 }
 0x136   : > { %v879_v41 = vpop.f32.mrf.mxu2 }
 0x137   : > { %v824_v42 = vpop.f32.mrf.mxu0  ;;  %v908_v43 = vpop.f32.mrf.mxu3 }
 0x138   : > { %v853_v44 = vpop.f32.mrf.mxu1  ;;  %v825_v47 = vadd.f32 %v824_v42, %v1888_v23  ;;  %v848_v23 = vadd.f32 %v847_v9, %v1876_v17  ;;  %v880_v17 = vadd.f32 %v879_v41, %v1886_v22  ;;  %v909_v3 = vadd.f32 %v908_v43, %v1890_v24 }
 0x139   : > { %v854_v51 = vadd.f32 %v853_v44, %v1892_v25  ;;  %v930_v25 = vmax.f32 %v851_v55, 0.0 }
 0x13a   : > { %v937_v58 = vmax.f32 %v825_v47, 0.0  ;;  %v922_v63 = vmax.f32 %v848_v23, 0.0  ;;  %v931_v22 = vmax.f32 %v880_v17, 0.0  ;;  %v932_v24 = vmax.f32 %v909_v3, 0.0 }
 0x13b   : > { %v938_v59 = vmax.f32 %v854_v51, 0.0 }
 0x13e   : > { %v882_v45 = vpop.f32.mrf.mxu2 }
 0x13f   : > { %v827_v46 = vpop.f32.mrf.mxu0  ;;  %v911_v48 = vpop.f32.mrf.mxu3  ;;  %v883_v19 = vadd.f32 %v882_v45, %v1894_v26  ;;  %v877_v26 = vadd.f32 %v876_v37, %v1878_v18 }
 0x140   : > { %v828_v49 = vadd.f32 %v827_v46, %v1896_v27  ;;  %v856_v50 = vpop.f32.mrf.mxu1  ;;  %v929_v27 = vmax.f32 %v822_v53, 0.0  ;;  %v912_v15 = vadd.f32 %v911_v48, %v1898_v28  ;;  %v906_v28 = vadd.f32 %v905_v2, %v1882_v20 }
 0x141   : > { %v857_v52 = vadd.f32 %v856_v50, %v1900_v29  ;;  %v921_v29 = vmax.f32 %v819_v57, 0.0  ;;  %v923_v5 = vmax.f32 %v877_v26, 0.0 }
 0x142   : > { %v945_v54 = vmax.f32 %v828_v49, 0.0  ;;  %v924_v0 = vmax.f32 %v906_v28, 0.0 }
 0x143   : > { %v946_v56 = vmax.f32 %v857_v52, 0.0 }
 0x144   : > { %1052 = vmatpush.msrb.mxu0 %v945_v54 }
 0x145   : > { %1072 = vmatpush.msrb.mxu1 %v946_v56 }
 0x146   : > { %1053 = vmatpush.msrb.mxu0 %v937_v58  ;;  %v885_v60 = vpop.f32.mrf.mxu2 }
 0x147   : > { %1073 = vmatpush.msrb.mxu1 %v938_v59  ;;  %v886_v21 = vadd.f32 %v885_v60, %v1902_v30  ;;  %v914_v62 = vpop.f32.mrf.mxu3  ;;  %v939_v30 = vmax.f32 %v883_v19, 0.0 }
 0x148   : > { %1054 = vmatpush.msrb.mxu0 %v929_v27  ;;  %v915_v61 = vadd.f32 %v914_v62, %v1904_v32  ;;  %v940_v32 = vmax.f32 %v912_v15, 0.0 }
 0x149   : > { %1074 = vmatpush.msrb.mxu1 %v930_v25  ;;  %v947_v7 = vmax.f32 %v886_v21, 0.0 }
 0x14a   : > { %1055 = vmatpush.msrb.mxu0 %v921_v29  ;;  %v948_v9 = vmax.f32 %v915_v61, 0.0 }
 0x14b   : > { %1075 = vmatpush.msrb.mxu1 %v922_v63  ;;  %1352 = vmatmul.msk.f32.vlgmr.msrb.gmra.mxu0 %vm956_vm4, %v1913_v10 }
 0x14c   : > { %1092 = vmatpush.msrb.mxu2 %v947_v7  ;;  %1353 = vmatmul.msk.f32.vlgmr.msrb.gmra.mxu1 %vm956_vm4, %v1913_v10 }
 0x14d   : > { %1112 = vmatpush.msrb.mxu3 %v948_v9 }
 0x14e   : > { %1093 = vmatpush.msrb.mxu2 %v939_v30 }
 0x14f   : > { %1113 = vmatpush.msrb.mxu3 %v940_v32 }
 0x150   : > { %1094 = vmatpush.msrb.mxu2 %v931_v22 }
 0x151   : > { %1114 = vmatpush.msrb.mxu3 %v932_v24 }
 0x152   : > { %1095 = vmatpush.msrb.mxu2 %v923_v5 }
 0x153   : > { %1115 = vmatpush.msrb.mxu3 %v924_v0  ;;  %1354 = vmatmul.msk.f32.vlgmr.msrb.gmra.mxu2 %vm956_vm4, %v1913_v10 }
 0x154   : > { %1355 = vmatmul.msk.f32.vlgmr.msrb.gmra.mxu3 %vm956_vm4, %v1913_v10 }
 0x18b   : > { %v954_v18 = vpop.permute.xlu0 %953 }
 0x1a9   : > { %v997_v20 = vpop.f32.mrf.mxu1 }
 0x1aa   : > { %v977_v11 = vpop.f32.mrf.mxu0  ;;  %v998_v1 = vadd.f32 %v997_v20, %v954_v18 }
 0x1ab   : > { %v978_v13 = vadd.f32 %v977_v11, %v954_v18 }
 0x1ac   : > { %v1128_v31 = vrot.slane %v998_v1, 4 }
 0x1ae   : > { %v1133_v33 = vsel %vm1132_vm5, %v978_v13, %v1128_v31 }
 0x1af   : > { %1141 = vst [vmem:[%s309_s29] sm:$0x77] %v1133_v33 }
 0x1b5   : > { %v1017_v35 = vpop.f32.mrf.mxu2 }
 0x1b6   : > { %v1037_v14 = vpop.f32.mrf.mxu3  ;;  %v1018_v6 = vadd.f32 %v1017_v35, %v954_v18 }
 0x1b7   : > { %v1038_v12 = vadd.f32 %v1037_v14, %v954_v18 }
 0x1b9   : > { %v1129_v8 = vrot.slane %v1038_v12, 4 }
 0x1bb   : > { %v1134_v10 = vsel %vm1132_vm5, %v1018_v6, %v1129_v8 }
 0x1bc   : > { %1142 = vst [vmem:[%s309_s29 + $0x8] sm:$0x77] %v1134_v10 }
 0x1c8   : > { %v1057_v16 = vpop.f32.mrf.mxu0 }
 0x1c9   : > { %v1077_v37 = vpop.f32.mrf.mxu1  ;;  %v1058_v39 = vadd.f32 %v1057_v16, %v954_v18 }
 0x1ca   : > { %v1078_v38 = vadd.f32 %v1077_v37, %v954_v18 }
 0x1cc   : > { %v1130_v2 = vrot.slane %v1078_v38, 4 }
 0x1ce   : > { %v1135_v34 = vsel %vm1132_vm5, %v1058_v39, %v1130_v2 }
 0x1cf   : > { %1143 = vst [vmem:[%s309_s29 + $0x10] sm:$0x77] %v1135_v34 }
 0x1d6   : > { %v1097_v4 = vpop.f32.mrf.mxu2 }
 0x1d7   : > { %v1117_v40 = vpop.f32.mrf.mxu3  ;;  %v1098_v42 = vadd.f32 %v1097_v4, %v954_v18 }
 0x1d8   : > { %v1118_v36 = vadd.f32 %v1117_v40, %v954_v18 }
 0x1da   : > { %v1131_v41 = vrot.slane %v1118_v36, 4 }
 0x1dc   : > { %v1136_v43 = vsel %vm1132_vm5, %v1098_v42, %v1131_v41 }
 0x1dd   : > { %1144 = vst [vmem:[%s309_s29 + $0x18] sm:$0x77] %v1136_v43 }
 0x1de   : > { %1504 = shalt.err (!%p1501_p0)
}
 0x1df   : > { %1368 = dma.vmem_to_hbm [thread:$0]  (%p1635_p11), %s1160_s26, 512, %s1162_s14, %s1146_s12  }
 0x1e0 PF: > { %s1173_s11 = sand.u32 1, %s1535_s21   ;;  %p2009_p1 = scmp.ge.s32.totalorder %s1547_s24, 2 }
 0x1e1   : > { %s1174_s8 = scalar_lea.sflag [#allocation4], %s1173_s11 }
 0x1e2   : > { %p1378_p4 = pnand %p2009_p1, %p1639_p12 }
 0x1e4   : > { %p1379_p7 = pneg %p1378_p4 }
 0x1e6   : > { %1530 = dma.done.wait (%p1379_p7), %s1174_s8, 512  }
 0x1e7   : > { %1532 = vsyncadd (%p1379_p7), %s1174_s8, 4294966784  ;;  %s2010_s20 = sld [smem:[#allocation11_spill]]  ;;  %p22_p5 = scmp.ge.s32.totalorder %s1610_s27, 4  }
 0x1e8   : > { %s2011_s23 = sld [smem:[#allocation12_spill]]  ;;  %s2012_s21 = smov %s1539_s22 }
 0x1e9   : > { %s2014_s24 = smov %s1610_s27  ;;  %24 = sbr.rel (!%p22_p5) target bundleno = 9 (0x9), region = 102 }
 0x1ed   : > { %s2013_s22 = smov %s2010_s20 }
 0x1ee   :  { %1180 = vsyncpa [#allocation3], 1 }
 0x1ef   :  { %1182 = vsyncpa [#allocation3 + $0x1], 1 }
 0x1f0   :  { %1183 = vsyncpa [#allocation6], 1 }
 0x1f1   :  { %1185 = vsyncpa [#allocation6 + $0x1], 1 }
 0x1f2   :  { %1186 = vsyncpa [#allocation4], 1 }
 0x1f3   :  { %1188 = vsyncpa [#allocation4 + $0x1], 1 }

</bundles_post_ra>
